<compile_context>
chip_gen: v5e
topology: v5e:2x2
jax: 0.10.0
libtpu: 0.0.40
codegen_flags: <defaults>
</compile_context>

<pallas_src>
import functools

import jax
import jax.numpy as jnp
import numpy as np
from jax import lax
from jax.experimental import pallas as pl
from jax.experimental.pallas import tpu as pltpu

_EPS = 1e-8                 # torch F.cosine_similarity eps
_EPS2 = _EPS * _EPS


# --------------------------------------------------------------------------------------
# generation-specific VMEM budgets (trace-time Python ints)
# --------------------------------------------------------------------------------------
def _vmem_capacity_bytes():
    try:
        return int(pltpu.get_tpu_info().vmem_capacity_bytes)
    except Exception:
        return 64 * 1024 * 1024          # conservative default (v7x per-TensorCore)


_VMEM_CAPACITY = _vmem_capacity_bytes()
_VMEM_LIMIT_BYTES = max(
    32 * 1024 * 1024,
    min(_VMEM_CAPACITY * 3 // 4, _VMEM_CAPACITY - 16 * 1024 * 1024),
)
_STREAM_BUDGET = _VMEM_LIMIT_BYTES - 8 * 1024 * 1024     # double-buffered stream budget
_MAX_ROW_TILE = 1024 if _VMEM_CAPACITY >= 128 * 1024 * 1024 else 512


# --------------------------------------------------------------------------------------
# tile-size helpers (static shapes -> Python ints, evaluated at trace time)
# --------------------------------------------------------------------------------------
def _sublane_multiple(*dtypes):
    """Row-tile alignment: 8 for f32, 16 for bf16, 32 for int8/fp8 (packed sublanes)."""
    mult = 8
    for d in dtypes:
        mult = max(mult, 8 * max(1, 4 // jnp.dtype(d).itemsize))
    return mult


def _choose_row_tile(n, per_row_bytes, budget, *dtypes):
    """Largest aligned row tile fitting the VMEM budget, keeping >= 2 grid steps."""
    mult = _sublane_multiple(*dtypes)
    if n <= mult:
        return max(int(n), 1)            # block dim == full dim is always legal
    cap = max(mult, min(_MAX_ROW_TILE, budget // max(per_row_bytes, 1)))
    half = max(mult, ((-(-n // 2)) // mult) * mult)   # >=2 steps -> both v7x cores used
    tm = min(int(cap), int(n), int(half))
    return max(mult, (tm // mult) * mult)


def _choose_k_tile(dt, ds, w_bytes, weight_budget):
    """Largest 128-multiple exact divisor of Dt whose double-buffered W tile fits."""
    start = (dt // 128) * 128
    for cand in range(start, 0, -128):
        if dt % cand == 0 and 2 * cand * ds * w_bytes <= weight_budget:
            return cand
    return dt


# --------------------------------------------------------------------------------------
# shared in-kernel epilogue
# --------------------------------------------------------------------------------------
def _per_row_one_minus_cos(s, t):
    dot = jnp.sum(s * t, axis=-1, keepdims=True)                       # (TM, 1)
    ss = jnp.sum(s * s, axis=-1, keepdims=True)
    tt = jnp.sum(t * t, axis=-1, keepdims=True)
    # torch semantics: x/max(||x||,eps) . y/max(||y||,eps)  ==  dot * rsqrt(max(ss,eps^2))
    # * rsqrt(max(tt,eps^2)); the two rsqrts ride the EUP slot.
    inv = lax.rsqrt(jnp.maximum(ss, _EPS2)) * lax.rsqrt(jnp.maximum(tt, _EPS2))
    return 1.0 - dot * inv


def _valid_row_mask(shape, row_start, n_rows):
    row_ids = row_start + lax.broadcasted_iota(jnp.int32, shape, 0)
    return row_ids < n_rows


# --------------------------------------------------------------------------------------
# kernel 1: plain per-tile partial sums of (1 - cos)
# --------------------------------------------------------------------------------------
def _plain_partial_kernel(s_ref, t_ref, out_ref, *, n_rows, tm):
    s = s_ref[...].astype(jnp.float32)
    t = t_ref[...].astype(jnp.float32)
    per_row = _per_row_one_minus_cos(s, t)                              # (TM, 1)
    valid = _valid_row_mask(per_row.shape, pl.program_id(0) * tm, n_rows)
    tile_sum = jnp.sum(jnp.where(valid, per_row, 0.0))
    out_ref[...] = jnp.full(out_ref.shape, tile_sum, jnp.float32)       # lane-dense store


def _plain_partials(s2, t2):
    n, d = s2.shape
    in_bytes = jnp.dtype(s2.dtype).itemsize + jnp.dtype(t2.dtype).itemsize
    per_row_bytes = 2 * d * in_bytes                    # 2 pipeline buffers per stream
    tm = _choose_row_tile(n, per_row_bytes, _STREAM_BUDGET, s2.dtype, t2.dtype)
    nt = pl.cdiv(n, tm)
    kern = functools.partial(_plain_partial_kernel, n_rows=n, tm=tm)
    cost = pl.CostEstimate(flops=6 * n * d, transcendentals=2 * n,
                           bytes_accessed=n * d * in_bytes + nt * 8 * 128 * 4)
    out = pl.pallas_call(
        kern,
        out_shape=jax.ShapeDtypeStruct((nt, 8, 128), jnp.float32),
        grid=(nt,),
        in_specs=[pl.BlockSpec((tm, d), lambda i: (i, 0)),
                  pl.BlockSpec((tm, d), lambda i: (i, 0))],
        out_specs=pl.BlockSpec((1, 8, 128), lambda i: (i, 0, 0)),
        compiler_params=pltpu.CompilerParams(
            dimension_semantics=("parallel",),
            vmem_limit_bytes=_VMEM_LIMIT_BYTES),
        cost_estimate=cost,
    )(s2, t2)
    return out[:, 0, 0]                                                 # (nt,)


# --------------------------------------------------------------------------------------
# kernel 2: masked per-tile partials (weighted loss sum + weight sum)
# --------------------------------------------------------------------------------------
def _masked_partial_kernel(s_ref, t_ref, w_ref, out_ref, *, n_rows, tm):
    s = s_ref[...].astype(jnp.float32)
    t = t_ref[...].astype(jnp.float32)
    per_row = _per_row_one_minus_cos(s, t)                              # (TM, 1)
    valid = _valid_row_mask(per_row.shape, pl.program_id(0) * tm, n_rows)
    w = jnp.where(valid, w_ref[...].astype(jnp.float32), 0.0)
    loss_sum = jnp.sum(jnp.where(valid, per_row, 0.0) * w)
    w_sum = jnp.sum(w)
    lane = lax.broadcasted_iota(jnp.int32, out_ref.shape[1:], 1)        # (8, 128)
    out_ref[...] = jnp.where(lane == 0, loss_sum,
                             jnp.where(lane == 1, w_sum, 0.0))[None]


def _masked_partials(s2, t2, w2):
    n, d = s2.shape
    in_bytes = jnp.dtype(s2.dtype).itemsize + jnp.dtype(t2.dtype).itemsize
    per_row_bytes = 2 * d * in_bytes + 2 * 4
    tm = _choose_row_tile(n, per_row_bytes, _STREAM_BUDGET, s2.dtype, t2.dtype)
    nt = pl.cdiv(n, tm)
    kern = functools.partial(_masked_partial_kernel, n_rows=n, tm=tm)
    cost = pl.CostEstimate(flops=7 * n * d, transcendentals=2 * n,
                           bytes_accessed=n * d * in_bytes + n * 4 + nt * 8 * 128 * 4)
    out = pl.pallas_call(
        kern,
        out_shape=jax.ShapeDtypeStruct((nt, 8, 128), jnp.float32),
        grid=(nt,),
        in_specs=[pl.BlockSpec((tm, d), lambda i: (i, 0)),
                  pl.BlockSpec((tm, d), lambda i: (i, 0)),
                  pl.BlockSpec((tm, 1), lambda i: (i, 0))],
        out_specs=pl.BlockSpec((1, 8, 128), lambda i: (i, 0, 0)),
        compiler_params=pltpu.CompilerParams(
            dimension_semantics=("parallel",),
            vmem_limit_bytes=_VMEM_LIMIT_BYTES),
        cost_estimate=cost,
    )(s2, t2, w2)
    return out[:, 0, 0], out[:, 0, 1]


# --------------------------------------------------------------------------------------
# kernel 3: fused Linear(Dt->Ds) projection + cosine, W^T fully VMEM-resident
# --------------------------------------------------------------------------------------
def _fused_resident_kernel(s_ref, t_ref, wt_ref, b_ref, out_ref, *, n_rows, tm):
    t_proj = jnp.dot(t_ref[...], wt_ref[...], preferred_element_type=jnp.float32)
    t_proj = t_proj + b_ref[...].astype(jnp.float32)                    # (TM, Ds)
    s = s_ref[...].astype(jnp.float32)
    per_row = _per_row_one_minus_cos(s, t_proj)
    valid = _valid_row_mask(per_row.shape, pl.program_id(0) * tm, n_rows)
    tile_sum = jnp.sum(jnp.where(valid, per_row, 0.0))
    out_ref[...] = jnp.full(out_ref.shape, tile_sum, jnp.float32)


# kernel 3b: K-tiled fallback (only when the full weight cannot be VMEM-resident)
def _fused_ktiled_kernel(s_ref, t_ref, wt_ref, b_ref, out_ref, acc_ref, *, n_rows, tm):
    k = pl.program_id(1)
    nk = pl.num_programs(1)

    @pl.when(k == 0)
    def _():
        acc_ref[...] = jnp.zeros_like(acc_ref)

    acc_ref[...] += jnp.dot(t_ref[...], wt_ref[...], preferred_element_type=jnp.float32)

    @pl.when(k == nk - 1)
    def _():
        t_proj = acc_ref[...] + b_ref[...].astype(jnp.float32)
        s = s_ref[...].astype(jnp.float32)
        per_row = _per_row_one_minus_cos(s, t_proj)
        valid = _valid_row_mask(per_row.shape, pl.program_id(0) * tm, n_rows)
        out_ref[...] = jnp.full(out_ref.shape,
                                jnp.sum(jnp.where(valid, per_row, 0.0)), jnp.float32)


def _fused_partials(s2, t2, wt, b2):
    """s2: (N, Ds); t2: (N, Dt); wt: (Dt, Ds); b2: (1, Ds). Returns (nt,) partial sums."""
    n, ds = s2.shape
    dt = t2.shape[1]
    s_b = jnp.dtype(s2.dtype).itemsize
    t_b = jnp.dtype(t2.dtype).itemsize
    w_b = jnp.dtype(wt.dtype).itemsize
    mult = _sublane_multiple(s2.dtype, t2.dtype)

    weight_bytes_db = 2 * dt * ds * w_b                 # assume double-buffered alloc
    per_row_res = 2 * (ds * s_b + dt * t_b)
    resident = weight_bytes_db + mult * per_row_res + (1 << 20) <= _STREAM_BUDGET
    kt = dt
    if not resident:
        kt = _choose_k_tile(dt, ds, w_b, _STREAM_BUDGET // 2)
        if kt == dt:
            # TODO(synk): for weights too large even to K-tile (huge Ds on v7x's 64 MiB),
            # also tile Ds or force bf16 W; for now keep W resident and let Mosaic decide.
            resident = True

    if resident:
        tm = _choose_row_tile(
            n, per_row_res,
            max(_STREAM_BUDGET - weight_bytes_db, mult * per_row_res),
            s2.dtype, t2.dtype)
        nt = pl.cdiv(n, tm)
        kern = functools.partial(_fused_resident_kernel, n_rows=n, tm=tm)
        cost = pl.CostEstimate(
            flops=2 * n * dt * ds + 8 * n * ds, transcendentals=2 * n,
            bytes_accessed=n * (ds * s_b + dt * t_b) + dt * ds * w_b + ds * 4
                           + nt * 8 * 128 * 4)
        out = pl.pallas_call(
            kern,
            out_shape=jax.ShapeDtypeStruct((nt, 8, 128), jnp.float32),
            grid=(nt,),
            in_specs=[pl.BlockSpec((tm, ds), lambda i: (i, 0)),   # student rows
                      pl.BlockSpec((tm, dt), lambda i: (i, 0)),   # teacher rows
                      pl.BlockSpec((dt, ds), lambda i: (0, 0)),   # W^T: DMA'd once (resident)
                      pl.BlockSpec((1, ds), lambda i: (0, 0))],   # bias
            out_specs=pl.BlockSpec((1, 8, 128), lambda i: (i, 0, 0)),
            compiler_params=pltpu.CompilerParams(
                dimension_semantics=("parallel",),
                vmem_limit_bytes=_VMEM_LIMIT_BYTES),
            cost_estimate=cost,
        )(s2, t2, wt, b2)
        return out[:, 0, 0]

    # ---- K-tiled fallback: weight genuinely exceeds the VMEM budget ----
    per_row_kt = 2 * (ds * s_b + kt * t_b) + ds * 4
    budget = max(_STREAM_BUDGET - 2 * kt * ds * w_b, mult * per_row_kt)
    tm = _choose_row_tile(n, per_row_kt, budget, s2.dtype, t2.dtype)
    nt = pl.cdiv(n, tm)
    kern = functools.partial(_fused_ktiled_kernel, n_rows=n, tm=tm)
    cost = pl.CostEstimate(
        flops=2 * n * dt * ds + 8 * n * ds, transcendentals=2 * n,
        # weight is re-streamed once per row tile in this fallback
        bytes_accessed=n * (ds * s_b + dt * t_b) + nt * dt * ds * w_b + nt * 8 * 128 * 4)
    out = pl.pallas_call(
        kern,
        out_shape=jax.ShapeDtypeStruct((nt, 8, 128), jnp.float32),
        grid=(nt, dt // kt),                             # reduction (K) axis last
        in_specs=[pl.BlockSpec((tm, ds), lambda i, k: (i, 0)),
                  pl.BlockSpec((tm, kt), lambda i, k: (i, k)),
                  pl.BlockSpec((kt, ds), lambda i, k: (k, 0)),
                  pl.BlockSpec((1, ds), lambda i, k: (0, 0))],
        out_specs=pl.BlockSpec((1, 8, 128), lambda i, k: (i, 0, 0)),
        scratch_shapes=[pltpu.VMEM((tm, ds), jnp.float32)],
        compiler_params=pltpu.CompilerParams(
            dimension_semantics=("parallel", "arbitrary"),
            vmem_limit_bytes=_VMEM_LIMIT_BYTES),
        cost_estimate=cost,
    )(s2, t2, wt, b2)
    return out[:, 0, 0]


# --------------------------------------------------------------------------------------
# jitted entry points (only num_tiles scalars are reduced in plain JAX)
# --------------------------------------------------------------------------------------
@jax.jit
def plain_cosine_loss(s2, t2):
    return jnp.sum(_plain_partials(s2, t2)) / s2.shape[0]


@jax.jit
def masked_cosine_loss(s2, t2, w2):
    loss_part, w_part = _masked_partials(s2, t2, w2)
    # All-zero mask -> 0/0 = NaN, matching PyTorch's mean over an empty selection.
    return jnp.sum(loss_part) / jnp.sum(w_part)


@jax.jit
def mapped_cosine_loss(s2, t2, wt, b2):
    return jnp.sum(_fused_partials(s2, t2, wt, b2)) / s2.shape[0]


# --------------------------------------------------------------------------------------
# module wrapper
# --------------------------------------------------------------------------------------
class CosineHiddenStateLossPallas:
    """JAX/Pallas port of CosineHiddenStateLoss."""

    def __init__(self, need_mapping=False, teacher_hidden_state_dim=None,
                 student_hidden_state_dim=None, key=None, weight_dtype=None):
        self.need_mapping = need_mapping
        if need_mapping:
            assert teacher_hidden_state_dim is not None
            assert student_hidden_state_dim is not None
            self.teacher_hidden_state_dim = teacher_hidden_state_dim
            self.student_hidden_state_dim = student_hidden_state_dim
            # deterministic nn.Linear-style init: U(-1/sqrt(fan_in), 1/sqrt(fan_in))
            kw, kb = jax.random.split(key if key is not None else jax.random.PRNGKey(42))
            bound = 1.0 / float(teacher_hidden_state_dim) ** 0.5
            self.w = jax.random.uniform(
                kw, (student_hidden_state_dim, teacher_hidden_state_dim),
                jnp.float32, -bound, bound)
            self.b = jax.random.uniform(
                kb, (student_hidden_state_dim,), jnp.float32, -bound, bound)
            # pre-transposed (and optionally pre-cast, e.g. bf16 for bf16 activations)
            # once so per-call work is just the fused kernel
            wd = weight_dtype if weight_dtype is not None else self.w.dtype
            self.wt = self.w.T.astype(wd)                                 # (Dt, Ds)
            self.b2 = self.b.reshape(1, student_hidden_state_dim)         # (1, Ds)

    def __call__(self, s_hidden_states, t_hidden_states, attention_mask=None):
        if s_hidden_states.ndim > 3:
            raise TypeError("Cosine loss can be applied only to flatten hiddens")

        if attention_mask is not None:
            # mask path takes precedence (matches _cosine_loss_hf)
            assert s_hidden_states.shape == t_hidden_states.shape
            d = s_hidden_states.shape[-1]
            weights = (attention_mask != 0).astype(jnp.float32).reshape(-1, 1)
            return masked_cosine_loss(
                s_hidden_states.reshape(-1, d),
                t_hidden_states.reshape(-1, d),
                weights)

        if self.need_mapping:
            assert s_hidden_states.shape[-1] == self.student_hidden_state_dim
            assert t_hidden_states.shape[-1] == self.teacher_hidden_state_dim
            s2 = s_hidden_states.reshape(-1, self.student_hidden_state_dim)
            t2 = t_hidden_states.reshape(-1, self.teacher_hidden_state_dim)
            return mapped_cosine_loss(s2, t2, self.wt, self.b2)

        d = s_hidden_states.shape[-1]
        return plain_cosine_loss(
            s_hidden_states.reshape(-1, d), t_hidden_states.reshape(-1, d))


# --------------------------------------------------------------------------------------
# pure-JAX reference (PyTorch per-norm eps clamp) for verification
# --------------------------------------------------------------------------------------
def _ref_cosine_loss(s2, t2, w):
    dot = jnp.sum(s2 * t2, axis=-1)
    ns = jnp.maximum(jnp.sqrt(jnp.sum(s2 * s2, axis=-1)), _EPS)
    nt = jnp.maximum(jnp.sqrt(jnp.sum(t2 * t2, axis=-1)), _EPS)
    cos = dot / (ns * nt)
    return jnp.sum((1.0 - cos) * w) / jnp.sum(w)


if __name__ == "__main__":
    key = jax.random.PRNGKey(0)
    k1, k2, k3, k4, k5, k6, kproj = jax.random.split(key, 7)

    B, S, Ds, Dt = 2, 8, 32, 48
    s = jax.random.normal(k1, (B, S, Ds), jnp.float32)
    t_same = jax.random.normal(k2, (B, S, Ds), jnp.float32)
    t_teacher = jax.random.normal(k3, (B, S, Dt), jnp.float32)
    attn_mask = (jax.random.uniform(k4, (B, S)) > 0.3).astype(jnp.int32)
    attn_mask = attn_mask.at[0, 0].set(1)   # guarantee at least one selected token

    loss_nomap = CosineHiddenStateLossPallas(need_mapping=False)
    loss_map = CosineHiddenStateLossPallas(
        need_mapping=True, teacher_hidden_state_dim=Dt,
        student_hidden_state_dim=Ds, key=kproj)

    # 1) attention-mask path
    out_mask = jax.block_until_ready(loss_nomap(s, t_same, attn_mask))
    ref_mask = _ref_cosine_loss(
        s.reshape(-1, Ds), t_same.reshape(-1, Ds),
        (attn_mask != 0).astype(jnp.float32).reshape(-1))
    assert np.allclose(np.asarray(out_mask), np.asarray(ref_mask), rtol=1e-5, atol=1e-5)

    # 2) plain path (no mask, no mapping)
    out_plain = jax.block_until_ready(loss_nomap(s, t_same))
    ref_plain = _ref_cosine_loss(
        s.reshape(-1, Ds), t_same.reshape(-1, Ds), jnp.ones((B * S,), jnp.float32))
    assert np.allclose(np.asarray(out_plain), np.asarray(ref_plain), rtol=1e-5, atol=1e-5)

    # 3) need_mapping path (fused Linear projection + cosine, W^T VMEM-resident)
    out_map = jax.block_until_ready(loss_map(s, t_teacher))
    t_proj_ref = t_teacher.reshape(-1, Dt) @ loss_map.w.T + loss_map.b
    ref_map = _ref_cosine_loss(
        s.reshape(-1, Ds), t_proj_ref, jnp.ones((B * S,), jnp.float32))
    assert np.allclose(np.asarray(out_map), np.asarray(ref_map), rtol=1e-4, atol=1e-5)

    # 4) tail-masking check: N not a multiple of the row tile (exercises the in-kernel
    #    broadcasted_iota row masking on both the plain and the fused path)
    S2 = 13
    s_t = jax.random.normal(k5, (B, S2, Ds), jnp.float32)
    t_t = jax.random.normal(k6, (B, S2, Ds), jnp.float32)
    t_teach_t = jax.random.normal(k4, (B, S2, Dt), jnp.float32)

    out_tail = jax.block_until_ready(loss_nomap(s_t, t_t))
    ref_tail = _ref_cosine_loss(
        s_t.reshape(-1, Ds), t_t.reshape(-1, Ds), jnp.ones((B * S2,), jnp.float32))
    assert np.allclose(np.asarray(out_tail), np.asarray(ref_tail), rtol=1e-5, atol=1e-5)

    out_map_tail = jax.block_until_ready(loss_map(s_t, t_teach_t))
    t_proj_ref2 = t_teach_t.reshape(-1, Dt) @ loss_map.w.T + loss_map.b
    ref_map_tail = _ref_cosine_loss(
        s_t.reshape(-1, Ds), t_proj_ref2, jnp.ones((B * S2,), jnp.float32))
    assert np.allclose(np.asarray(out_map_tail), np.asarray(ref_map_tail),
                       rtol=1e-4, atol=1e-5)

    print("KERNEL_OK")
</pallas_src>

<mosaic_0001>
module attributes {stable_mosaic.version = 11 : i64} {
  func.func @_masked_partial_kernel(%arg0: i32, %arg1: memref<8x32xf32, #tpu.memory_space<vmem>>, %arg2: memref<8x32xf32, #tpu.memory_space<vmem>>, %arg3: memref<8x1xf32, #tpu.memory_space<vmem>>, %arg4: memref<1x8x128xf32, #tpu.memory_space<vmem>>) attributes {dimension_semantics = [#tpu.dimension_semantics<parallel>], iteration_bounds = array<i64: 2>, scalar_prefetch = 0 : i64, scratch_operands = 0 : i64, tpu.core_type = #tpu.core_type<tc>, window_params = [{transform_indices = @transform_0, window_bounds = array<i64: 8, 32>}, {transform_indices = @transform_1, window_bounds = array<i64: 8, 32>}, {transform_indices = @transform_2, window_bounds = array<i64: 8, 1>}, {transform_indices = @transform_3, window_bounds = array<i64: 1, 8, 128>}]} {
    %c0 = arith.constant 0 : index
    %c0_0 = arith.constant 0 : index
    %0 = vector.load %arg1[%c0, %c0_0] : memref<8x32xf32, #tpu.memory_space<vmem>>, vector<8x32xf32>
    %c0_1 = arith.constant 0 : index
    %c0_2 = arith.constant 0 : index
    %1 = vector.load %arg2[%c0_1, %c0_2] : memref<8x32xf32, #tpu.memory_space<vmem>>, vector<8x32xf32>
    %2 = arith.mulf %0, %1 : vector<8x32xf32>
    %cst = arith.constant dense<0.000000e+00> : vector<8xf32>
    %3 = vector.multi_reduction <add>, %2, %cst [1] : vector<8x32xf32> to vector<8xf32>
    %4 = vector.shape_cast %3 : vector<8xf32> to vector<8x1xf32>
    %5 = arith.mulf %0, %0 : vector<8x32xf32>
    %cst_3 = arith.constant dense<0.000000e+00> : vector<8xf32>
    %6 = vector.multi_reduction <add>, %5, %cst_3 [1] : vector<8x32xf32> to vector<8xf32>
    %7 = vector.shape_cast %6 : vector<8xf32> to vector<8x1xf32>
    %8 = arith.mulf %1, %1 : vector<8x32xf32>
    %cst_4 = arith.constant dense<0.000000e+00> : vector<8xf32>
    %9 = vector.multi_reduction <add>, %8, %cst_4 [1] : vector<8x32xf32> to vector<8xf32>
    %10 = vector.shape_cast %9 : vector<8xf32> to vector<8x1xf32>
    %cst_5 = arith.constant 1.000000e-16 : f32
    %11 = vector.broadcast %cst_5 : f32 to vector<8x1xf32>
    %12 = arith.maximumf %7, %11 : vector<8x1xf32>
    %13 = math.rsqrt %12 : vector<8x1xf32>
    %cst_6 = arith.constant 1.000000e-16 : f32
    %14 = vector.broadcast %cst_6 : f32 to vector<8x1xf32>
    %15 = arith.maximumf %10, %14 : vector<8x1xf32>
    %16 = math.rsqrt %15 : vector<8x1xf32>
    %17 = arith.mulf %13, %16 : vector<8x1xf32>
    %18 = arith.mulf %4, %17 : vector<8x1xf32>
    %cst_7 = arith.constant 1.000000e+00 : f32
    %19 = vector.broadcast %cst_7 : f32 to vector<8x1xf32>
    %20 = arith.subf %19, %18 : vector<8x1xf32>
    %c8_i32 = arith.constant 8 : i32
    %21 = arith.muli %arg0, %c8_i32 : i32
    %22 = tpu.iota {dimensions = array<i32: 0>} : vector<8x1xi32>
    %23 = vector.broadcast %21 : i32 to vector<8x1xi32>
    %24 = arith.addi %23, %22 : vector<8x1xi32>
    %c16_i32 = arith.constant 16 : i32
    %25 = vector.broadcast %c16_i32 : i32 to vector<8x1xi32>
    %26 = arith.cmpi slt, %24, %25 : vector<8x1xi32>
    %c0_8 = arith.constant 0 : index
    %c0_9 = arith.constant 0 : index
    %27 = vector.load %arg3[%c0_8, %c0_9] : memref<8x1xf32, #tpu.memory_space<vmem>>, vector<8x1xf32>
    %cst_10 = arith.constant 0.000000e+00 : f32
    %28 = vector.broadcast %cst_10 : f32 to vector<8x1xf32>
    %29 = arith.select %26, %27, %28 : vector<8x1xi1>, vector<8x1xf32>
    %cst_11 = arith.constant 0.000000e+00 : f32
    %30 = vector.broadcast %cst_11 : f32 to vector<8x1xf32>
    %31 = arith.select %26, %20, %30 : vector<8x1xi1>, vector<8x1xf32>
    %32 = arith.mulf %31, %29 : vector<8x1xf32>
    %33 = vector.shape_cast %32 : vector<8x1xf32> to vector<1x8x1xf32>
    %cst_12 = arith.constant dense<0.000000e+00> : vector<1xf32>
    %34 = vector.multi_reduction <add>, %33, %cst_12 [1, 2] : vector<1x8x1xf32> to vector<1xf32>
    %35 = vector.shape_cast %34 : vector<1xf32> to vector<1x1x1xf32>
    %36 = vector.extract %35[0, 0, 0] : f32 from vector<1x1x1xf32>
    %37 = vector.shape_cast %29 : vector<8x1xf32> to vector<1x8x1xf32>
    %cst_13 = arith.constant dense<0.000000e+00> : vector<1xf32>
    %38 = vector.multi_reduction <add>, %37, %cst_13 [1, 2] : vector<1x8x1xf32> to vector<1xf32>
    %39 = vector.shape_cast %38 : vector<1xf32> to vector<1x1x1xf32>
    %40 = vector.extract %39[0, 0, 0] : f32 from vector<1x1x1xf32>
    %41 = tpu.iota {dimensions = array<i32: 1>} : vector<8x128xi32>
    %c0_i32 = arith.constant 0 : i32
    %42 = vector.broadcast %c0_i32 : i32 to vector<8x128xi32>
    %43 = arith.cmpi eq, %41, %42 : vector<8x128xi32>
    %c1_i32 = arith.constant 1 : i32
    %44 = vector.broadcast %c1_i32 : i32 to vector<8x128xi32>
    %45 = arith.cmpi eq, %41, %44 : vector<8x128xi32>
    %cst_14 = arith.constant 0.000000e+00 : f32
    %46 = vector.broadcast %40 : f32 to vector<8x128xf32>
    %47 = vector.broadcast %cst_14 : f32 to vector<8x128xf32>
    %48 = arith.select %45, %46, %47 : vector<8x128xi1>, vector<8x128xf32>
    %49 = vector.broadcast %36 : f32 to vector<8x128xf32>
    %50 = arith.select %43, %49, %48 : vector<8x128xi1>, vector<8x128xf32>
    %51 = vector.shape_cast %50 : vector<8x128xf32> to vector<1x8x128xf32>
    %c0_15 = arith.constant 0 : index
    %c0_16 = arith.constant 0 : index
    %c0_17 = arith.constant 0 : index
    %52 = vector.load %arg4[%c0_15, %c0_16, %c0_17] : memref<1x8x128xf32, #tpu.memory_space<vmem>>, vector<1x8x128xf32>
    tpu.vector_store %arg4[%c0_15, %c0_16, %c0_17], %51 {strides = array<i32>} : memref<1x8x128xf32, #tpu.memory_space<vmem>>, vector<1x8x128xf32>,
    return
  }
  func.func @transform_0(%arg0: i32) -> (i32, i32) {
    %c0_i32 = arith.constant 0 : i32
    %c0_i32_0 = arith.constant 0 : i32
    return %arg0, %c0_i32 : i32, i32
  }
  func.func @transform_1(%arg0: i32) -> (i32, i32) {
    %c0_i32 = arith.constant 0 : i32
    %c0_i32_0 = arith.constant 0 : i32
    return %arg0, %c0_i32 : i32, i32
  }
  func.func @transform_2(%arg0: i32) -> (i32, i32) {
    %c0_i32 = arith.constant 0 : i32
    %c0_i32_0 = arith.constant 0 : i32
    return %arg0, %c0_i32 : i32, i32
  }
  func.func @transform_3(%arg0: i32) -> (i32, i32, i32) {
    %c0_i32 = arith.constant 0 : i32
    %c0_i32_0 = arith.constant 0 : i32
    %c0_i32_1 = arith.constant 0 : i32
    return %arg0, %c0_i32, %c0_i32_0 : i32, i32, i32
  }
}

</mosaic_0001>

<bundles_post_ra>
// kernel: masked_cosine_loss.1
= control target key start
LH: loop header
LB: loop body
LE: loop exit
PB: predicated region body
PF: predicated region fallthrough
CT: control target
= control target key end

     0   :  { %8 = vsyncpa [#allocation3], 0  ;;  %s647_s0 = inlined_call_operand.vmem [shape: f32[16,32], index: 0, kind: input, shape index: {}]   ;;  %s648_s1 = inlined_call_operand.hbm [shape: f32[16,32], index: 1, kind: input, shape index: {}]   ;;  %s649_s2 = inlined_call_operand.vmem [shape: f32[16,1], index: 2, kind: input, shape index: {}]   ;;  %s650_s3 = inlined_call_operand.vmem [shape: f32[2,8,128], index: 3, kind: output, shape index: {}]  }
   0x1   :  { %10 = vsyncpa [#allocation3 + $0x1], 0  ;;  %s537_s12 = smov 0   ;;  %s539_s13 = smov 0  }
   0x2   :  { %s541_s14 = smov 0   ;;  %s543_s15 = smov 0  }
   0x3 LB: > { %s556_s16 = sadd.s32 4294967295, %s515_s15   ;;  %s559_s17 = sadd.s32 1, %s515_s15   ;;  %s515_s15 = sphi %s543_s15, %s657_s15   ;;  %s511_s14 = sphi %s541_s14, %s656_s14   ;;  %s507_s13 = sphi %s539_s13, %s655_s13   ;;  %s503_s12 = sphi %s537_s12, %s654_s12  }
   0x4   : > { %s46_s18 = ssub.s32 %s515_s15, %s559_s17  ;;  %s49_s19 = sadd.s32 1, %s511_s14 }
   0x5   : > { %p47_p0 = scmp.eq.s32.totalorder %s46_s18, 0  ;;  %p56_p1 = scmp.ne.s32.totalorder %s511_s14, %s507_s13 }
   0x6   : > { %p57_p2 = scmp.eq.s32.totalorder %s515_s15, 0  ;;  %p62_p3 = scmp.ne.s32.totalorder %s507_s13, %s503_s12 }
   0x7   : > { %s569_s20 = scalar_select %p47_p0, %s511_s14, %s49_s19  }
   0x8   : > { %p571_p4 = por %p57_p2, %p56_p1  ;;  %p63_p5 = scmp.eq.s32.totalorder %s556_s16, 0 }
   0x9   : > { %p414_p6 = scmp.lt.s32.totalorder %s515_s15, 2  ;;  %s145_s23 = sand.u32 1, %s511_s14  }
   0xa   : > { %p577_p7 = por %p63_p5, %p62_p3  ;;  %s394_s24 = sshll.u32 %s145_s23, 3 }
   0xb   : > { %s395_s25 = sshll.u32 %s515_s15, 3  ;;  %s149_s29 = scalar_lea.vmem [#allocation2], %s394_s24 }
   0xc   : > { %s153_s28 = scalar_lea.hbm %s648_s1, %s395_s25  ;;  %s157_s30 = sshll.u32 %s149_s29, 4  ;;  %s158_s30 = int_to_ptr.vmem [resolvable:$true] %s157_s30 }
   0xd   : > { %s155_s4 = sshll.u32 %s153_s28, 4  ;;  %p588_p8 = pnand %p414_p6, %p571_p4  ;;  %s156_s4 = int_to_ptr.hbm [resolvable:$true] %s155_s4 }
   0xe   : > { %p396_p9 = scmp.ge.s32.totalorder %s515_s15, 1  ;;  %p169_p10 = scmp.lt.s32.totalorder %s515_s15, 3 }
   0xf   : > { %s146_s6 = scalar_lea.sflag [#allocation3], %s145_s23  ;;  %s451_s7 = sshra.s32 %s156_s4, 4  ;;  %s452_s7 = int_to_ptr.hbm [resolvable:$true] %s451_s7 }
  0x10   : > { %s453_s8 = scalar_lea.hbm %s452_s7, 8  ;;  %p455_p12 = pneg %p588_p8 }
  0x11   : > { %p454_p11 = scmp.ne.s32.totalorder %s452_s7, %s453_s8  ;;  %s458_s11 = scalar_lea.hbm %s648_s1, 16 }
  0x12   : > { %p459_p1 = scmp.lt.s32.totalorder %s452_s7, %s648_s1  ;;  %p460_p2 = scmp.lt.s32.totalorder %s458_s11, %s453_s8 }
  0x13   : > { %p456_p13 = pnand %p455_p12, %p454_p11 }
  0x14   : > { %p461_p3 = por %p460_p2, %p459_p1 }
  0x15   : > { %p457_p0 = pneg %p456_p13 }
  0x17   : > { %p462_p4 = pnand %p461_p3, %p457_p0 }
  0x19   : > { %465 = shalt.err (!%p462_p4)
}
  0x1a   : > { %413 = dma.hbm_to_vmem [thread:$0]  (!%p588_p8), %s156_s4, 128, %s158_s30, %s146_s6  }
  0x1b   : > { %p170_p5 = pnand %p396_p9, %p169_p10 }
  0x1c   : > { %s175_s19 = sand.u32 (!%p170_p5), 1, %s507_s13  }
  0x1d   : > { %173 = sbr.rel (%p170_p5) target bundleno = 382 (0x17e), region = 32  ;;  %s397_s21 = sshll.u32 (!%p170_p5), %s175_s19, 3 }
  0x1e   : > { %s176_s23 = scalar_lea.sflag (!%p170_p5), [#allocation3], %s175_s19  ;;  %s179_s24 = scalar_lea.vmem (!%p170_p5), [#allocation2], %s397_s21 }
  0x22   : > { %498 = dma.done.wait (%p577_p7), %s176_s23, 128  }
  0x23   : > { %500 = vsyncadd (%p577_p7), %s176_s23, 4294967168  ;;  %p210_p6 = scmp.lt.s32.totalorder %s556_s16, 1  ;;  %vm225_vm0 = vcmask 261120   ;;  %v223_v1 = vld [vmem:[%s179_s24] sm:$0xff]  ;;  %s401_s22 = sshll.u32 %s556_s16, 3  ;;  %v263_v8 = vlaneseq  ;;  %vm272_vm2 = vcmask 7168  }
  0x24   : > { %v233_v6 = vmul.f32 %v223_v1, %v223_v1  ;;  %v265_v10 = vstv %s401_s22 }
  0x25   : > { %s211_s25 = scalar_select %p210_p6, %s556_s16, 1  ;;  %v264_v9 = vshrl.u32 %v263_v8, 7  ;;  %v294_v54 = vand.u32 127, %v263_v8 }
  0x26   : > { %v234_v7 = vsel %vm225_vm0, %v233_v6, 0.0 }
  0x27   : > { %s615_s26 = sshll.u32 %s211_s25, 3  ;;  %v266_v11 = vadd.s32 %v265_v10, %v264_v9  ;;  %vm296_vm9 = vcmp.eq.s32.totalorder %v294_v54, 1  ;;  %vm295_vm10 = vcmp.eq.s32.totalorder %v294_v54, 0 }
  0x28   : > { %s213_s28 = scalar_lea.vmem %s647_s0, %s615_s26  ;;  %s217_s4 = scalar_lea.vmem %s649_s2, %s615_s26 }
  0x29   : > { %v222_v0 = vld [vmem:[%s213_s28] sm:$0xff]  ;;  %vm267_vm1 = vcmp.lt.s32.totalorder %v266_v11, 16  ;;  %s221_s8 = scalar_lea.vmem %s650_s3, %s615_s26 }
  0x2a   : > { %v229_v2 = vmul.f32 %v222_v0, %v222_v0  ;;  %v224_v3 = vmul.f32 %v223_v1, %v222_v0  ;;  %v268_v12 = vld [vmem:[%s217_s4] sm:$0xff] }
  0x2b   : > { %v269_v13 = vsel %vm267_vm1, %v268_v12, 0.0 }
  0x2c   : > { %v230_v4 = vsel %vm225_vm0, %v229_v2, 0.0  ;;  %v226_v5 = vsel %vm225_vm0, %v224_v3, 0.0  ;;  %v283_v15 = vsel %vm272_vm2, %v269_v13, 0.0 }
  0x2d   : > { %231 = vadd.xlane.f32.xlu0 %v230_v4  ;;  %227 = vadd.xlane.f32.xlu1 %v226_v5 }
  0x2e   : > { %284 = vadd.xlane.f32.xlu2 %v283_v15 }
  0x35   : > { %235 = vadd.xlane.f32.xlu0 %v234_v7 }
  0xa0   : > { %v232_v14 = vpop.xlane.xlu0 %231  ;;  %v228_v33 = vpop.xlane.xlu1 %227 }
  0xa1   : > { %v237_v16 = vmax.f32 %v232_v14, 1e-16  ;;  %v285_v40 = vpop.xlane.xlu2 %284 }
  0xa2   : > { %v286_v41 = vrot.slane %v285_v40, 4 }
  0xa3   : > { %447 = vrsqrt.f32 %v237_v16  ;;  %vm244_vm5 = vweird.f32 %v237_v16 }
  0xa4   : > { %v287_v42 = vadd.f32 %v286_v41, %v285_v40 }
  0xa6   : > { %v288_v43 = vrot.slane %v287_v42, 2 }
  0xa8   : > { %v236_v17 = vpop.xlane.xlu0 %235  ;;  %v289_v47 = vadd.f32 %v288_v43, %v287_v42 }
  0xa9   : > { %v448_v18 = vpop.eup %447  ;;  %v248_v19 = vmax.f32 %v236_v17, 1e-16 }
  0xaa   : > { %v239_v20 = vmul.f32 %v448_v18, %v237_v16  ;;  %vm245_vm3 = vweird.f32 %v448_v18  ;;  %v290_v50 = vrot.slane %v289_v47, 1 }
  0xab   : > { %449 = vrsqrt.f32 %v248_v19  ;;  %vm255_vm6 = vweird.f32 %v248_v19  ;;  %vm246_vm7 = vmor %vm244_vm5, %vm245_vm3 }
  0xac   : > { %v240_v21 = vmul.f32 %v448_v18, %v239_v20  ;;  %v291_v53 = vadd.f32 %v290_v50, %v289_v47 }
  0xae   : > { %v241_v22 = vmul.f32 0.5, %v240_v21 }
  0xb0   : > { %v242_v25 = vsub.f32 1.5, %v241_v22 }
  0xb1   : > { %v450_v23 = vpop.eup %449 }
  0xb2   : > { %v250_v24 = vmul.f32 %v450_v23, %v248_v19  ;;  %vm256_vm4 = vweird.f32 %v450_v23  ;;  %v243_v29 = vmul.f32 %v448_v18, %v242_v25 }
  0xb3   : > { %vm257_vm8 = vmor %vm255_vm6, %vm256_vm4 }
  0xb4   : > { %v251_v26 = vmul.f32 %v450_v23, %v250_v24  ;;  %v247_v31 = vsel %vm246_vm7, %v448_v18, %v243_v29 }
  0xb6   : > { %v252_v27 = vmul.f32 0.5, %v251_v26 }
  0xb8   : > { %v253_v28 = vsub.f32 1.5, %v252_v27 }
  0xba   : > { %v254_v30 = vmul.f32 %v450_v23, %v253_v28 }
  0xbc   : > { %v258_v32 = vsel %vm257_vm8, %v450_v23, %v254_v30 }
  0xbd   : > { %v259_v34 = vmul.f32 %v258_v32, %v247_v31 }
  0xbf   : > { %v260_v35 = vmul.f32 %v259_v34, %v228_v33 }
  0xc1   : > { %v261_v36 = vsub.f32 1.0, %v260_v35 }
  0xc3   : > { %v270_v37 = vsel %vm267_vm1, %v261_v36, 0.0 }
  0xc4   : > { %v271_v38 = vmul.f32 %v270_v37, %v269_v13 }
  0xc6   : > { %v273_v39 = vsel %vm272_vm2, %v271_v38, 0.0 }
  0xc7   : > { %274 = vadd.xlane.f32.xlu1 %v273_v39 }
 0x13a   : > { %v275_v44 = vpop.xlane.xlu1 %274 }
 0x13b   : > { %v276_v45 = vrot.slane %v275_v44, 4 }
 0x13d   : > { %v277_v46 = vadd.f32 %v276_v45, %v275_v44 }
 0x13f   : > { %v278_v48 = vrot.slane %v277_v46, 2 }
 0x141   : > { %v279_v49 = vadd.f32 %v278_v48, %v277_v46 }
 0x143   : > { %v280_v51 = vrot.slane %v279_v49, 1 }
 0x145   : > { %v281_v52 = vadd.f32 %v280_v51, %v279_v49 }
 0x147   : > { %404 = vpush %v281_v52 }
 0x148   : > { %406 = vpush %v291_v53 }
 0x178   : > { %s405_s16 = spop %404 }
 0x179   : > { %v299_v55 = vstv %s405_s16  ;;  %s407_s5 = spop %406 }
 0x17a   : > { %v297_v56 = vstv %s407_s5 }
 0x17b   : > { %v298_v57 = vsel %vm296_vm9, %v297_v56, 0.0 }
 0x17c   : > { %v300_v58 = vsel %vm295_vm10, %v299_v55, %v298_v57 }
 0x17d   : > { %301 = vst [vmem:[%s221_s8] sm:$0xff] %v300_v58 }
 0x17e PF: > { %p13_p7 = scmp.ge.s32.totalorder %s559_s17, 4   ;;  %s654_s12 = smov %s507_s13 }
 0x17f   : > { %s655_s13 = smov %s511_s14  ;;  %s656_s14 = smov %s569_s20 }
 0x180   : > { %s657_s15 = smov %s559_s17  ;;  %15 = sbr.rel (!%p13_p7) target bundleno = 3 (0x3), region = 78 }
 0x185   :  { %321 = vsyncpa [#allocation3], 1 }
 0x186   :  { %323 = vsyncpa [#allocation3 + $0x1], 1 }

</bundles_post_ra>
